<compile_context>
chip_gen: v6e
topology: v6e:2x2x1
jax: 0.10.0
libtpu: 0.0.40
codegen_flags: <defaults>
</compile_context>

<pallas_src>
import functools

import jax
import jax.numpy as jnp
from jax.experimental import pallas as pl
from jax.experimental.pallas import tpu as pltpu

_LANE = 128
_SUBLANE = 8


def _outconv_kernel(w_ref, b_ref, x_ref, o_ref, *, c_in, c_out):
    # w_ref: SMEM (C_out, C_in) f32 scalars
    # b_ref: SMEM (C_out,)      f32 scalars
    # x_ref: VMEM (Nb, C_in, T) input tile  (T lanes of flattened H*W)
    # o_ref: VMEM (Nb, C_out, T) output tile (lane-dense last dim)
    for co in range(c_out):                                # tiny, unrolled
        acc = x_ref[:, 0:1, :].astype(jnp.float32) * w_ref[co, 0]
        for ci in range(1, c_in):
            acc = acc + x_ref[:, ci:ci + 1, :].astype(jnp.float32) * w_ref[co, ci]
        # Store this output row directly; nothing tile-sized stays live.
        o_ref[:, co:co + 1, :] = (acc + b_ref[co]).astype(o_ref.dtype)


def _round_up(x, m):
    return (x + m - 1) // m * m


def _pick_hw_tile(hw, cap):
    # Whole row when it fits under the cap (full-dim last block is always
    # legal, even for non-128-multiple HW); otherwise a 128-multiple tile
    # equal to the cap, with the partial last block masked by Pallas.
    if hw <= cap:
        return hw
    return cap


def _pick_batch_block(n, c_in, c_out, tile, n_hw_blocks, itemsize,
                      target_bytes=1 << 20):
    # Pack several batch rows per grid step when a single row would move
    # only a few KB (amortizes the fixed per-step overhead).
    if n_hw_blocks != 1:
        return 1
    per_sample = (c_in + c_out) * tile * itemsize
    nb = max(1, min(n, target_bytes // max(per_sample, 1)))
    while n % nb != 0:          # full blocks only: no partial batch block
        nb -= 1
    return nb


def outconv_pallas(x_nchw, weight, bias, *, hw_tile_cap=128 * 1024):
    """1x1 conv: x (N, C_in, H, W), weight (C_out, C_in, 1, 1), bias (C_out,)."""
    N, C_in, H, W = x_nchw.shape
    C_out = weight.shape[0]
    HW = H * W
    assert hw_tile_cap % _LANE == 0

    x_flat = x_nchw.reshape(N, C_in, HW)                  # free, no transpose
    w_mat = weight.reshape(C_out, C_in).astype(jnp.float32)
    b_vec = bias.reshape(C_out).astype(jnp.float32)

    itemsize = x_nchw.dtype.itemsize
    tile = _pick_hw_tile(HW, hw_tile_cap)
    n_hw_blocks = pl.cdiv(HW, tile)
    nb = _pick_batch_block(N, C_in, C_out, tile, n_hw_blocks, itemsize)
    grid = (N // nb, n_hw_blocks)

    # Double-buffered VMEM footprint (sublane/lane padded) + headroom.
    lane_tile = _round_up(tile, _LANE)
    x_blk = nb * _round_up(C_in, _SUBLANE) * lane_tile * itemsize
    o_blk = nb * _round_up(C_out, _SUBLANE) * lane_tile * itemsize
    vmem_limit = int(max(32 << 20, 2 * (x_blk + o_blk) + (4 << 20)))

    kernel = functools.partial(_outconv_kernel, c_in=C_in, c_out=C_out)

    out_flat = pl.pallas_call(
        kernel,
        out_shape=jax.ShapeDtypeStruct((N, C_out, HW), x_nchw.dtype),
        grid_spec=pltpu.PrefetchScalarGridSpec(
            num_scalar_prefetch=0,
            grid=grid,
            in_specs=[
                # Tiny weight / bias live whole in SMEM (scalar reads,
                # no per-tile DMA, no wasted vregs).
                pl.BlockSpec(memory_space=pltpu.MemorySpace.SMEM),
                pl.BlockSpec(memory_space=pltpu.MemorySpace.SMEM),
                pl.BlockSpec((nb, C_in, tile), lambda n, j: (n, 0, j)),
            ],
            out_specs=pl.BlockSpec((nb, C_out, tile), lambda n, j: (n, 0, j)),
        ),
        compiler_params=pltpu.CompilerParams(
            dimension_semantics=("parallel", "parallel"),
            vmem_limit_bytes=vmem_limit),
    )(w_mat, b_vec, x_flat)

    # (N, C_out, H*W) -> (N, C_out, H, W): pure reshape, no data movement.
    return out_flat.reshape(N, C_out, H, W)


def _reference(x, weight, bias):
    C_out, C_in = weight.shape[0], weight.shape[1]
    return (jnp.einsum("nchw,oc->nohw", x, weight.reshape(C_out, C_in))
            + bias[None, :, None, None])


if __name__ == "__main__":
    key = jax.random.PRNGKey(0)
    k_x, k_w, k_b, k_x2 = jax.random.split(key, 4)

    N, C_in, C_out, Hs, Ws = 2, 4, 3, 16, 16
    x = jax.random.normal(k_x, (N, C_in, Hs, Ws), dtype=jnp.float32)
    # Conv2d-shaped params: (C_out, C_in, 1, 1) weight + (C_out,) bias
    weight = jax.random.normal(k_w, (C_out, C_in, 1, 1), dtype=jnp.float32) * 0.1
    bias = jax.random.normal(k_b, (C_out,), dtype=jnp.float32) * 0.1

    # Main case: small feature map -> batch-blocked single grid step.
    out = outconv_pallas(x, weight, bias)
    jax.block_until_ready(out)
    ref = _reference(x, weight, bias)
    assert out.shape == (N, C_out, Hs, Ws)
    assert jnp.allclose(out, ref, atol=1e-5), "mismatch vs reference"

    # Non-128-divisible HW with a tile that does not divide it: exercises the
    # masked partial last block (cap forced small so the test stays tiny).
    H2, W2 = 18, 18                                       # HW = 324, tile 128
    x2 = jax.random.normal(k_x2, (1, C_in, H2, W2), dtype=jnp.float32)
    out2 = outconv_pallas(x2, weight, bias, hw_tile_cap=128)
    jax.block_until_ready(out2)
    ref2 = _reference(x2, weight, bias)
    assert out2.shape == (1, C_out, H2, W2)
    assert jnp.allclose(out2, ref2, atol=1e-5), "mismatch vs reference (partial block)"

    print("KERNEL_OK")
</pallas_src>

<mosaic_0001>
module attributes {stable_mosaic.version = 11 : i64} {
  func.func @_outconv_kernel(%arg0: i32, %arg1: i32, %arg2: memref<3x4xf32, #tpu.memory_space<smem>>, %arg3: memref<3xf32, #tpu.memory_space<smem>>, %arg4: memref<2x4x256xf32, #tpu.memory_space<vmem>>, %arg5: memref<2x3x256xf32, #tpu.memory_space<vmem>>) attributes {dimension_semantics = [#tpu.dimension_semantics<parallel>, #tpu.dimension_semantics<parallel>], iteration_bounds = array<i64: 1, 1>, scalar_prefetch = 0 : i64, scratch_operands = 0 : i64, tpu.core_type = #tpu.core_type<tc>, window_params = [{transform_indices = @transform_0, window_bounds = array<i64: 3, 4>}, {transform_indices = @transform_1, window_bounds = array<i64: 3>}, {transform_indices = @transform_2, window_bounds = array<i64: 2, 4, 256>}, {transform_indices = @transform_3, window_bounds = array<i64: 2, 3, 256>}]} {
    %c0 = arith.constant 0 : index
    %c0_0 = arith.constant 0 : index
    %c0_1 = arith.constant 0 : index
    %0 = vector.load %arg4[%c0, %c0_0, %c0_1] : memref<2x4x256xf32, #tpu.memory_space<vmem>>, vector<2x1x256xf32>
    %c0_2 = arith.constant 0 : index
    %c0_3 = arith.constant 0 : index
    %1 = memref.load %arg2[%c0_2, %c0_3] : memref<3x4xf32, #tpu.memory_space<smem>>
    %2 = vector.broadcast %1 : f32 to vector<2x1x256xf32>
    %3 = arith.mulf %0, %2 : vector<2x1x256xf32>
    %c0_4 = arith.constant 0 : index
    %c1 = arith.constant 1 : index
    %c0_5 = arith.constant 0 : index
    %4 = vector.load %arg4[%c0_4, %c1, %c0_5] : memref<2x4x256xf32, #tpu.memory_space<vmem>>, vector<2x1x256xf32>
    %c0_6 = arith.constant 0 : index
    %c1_7 = arith.constant 1 : index
    %5 = memref.load %arg2[%c0_6, %c1_7] : memref<3x4xf32, #tpu.memory_space<smem>>
    %6 = vector.broadcast %5 : f32 to vector<2x1x256xf32>
    %7 = arith.mulf %4, %6 : vector<2x1x256xf32>
    %8 = arith.addf %3, %7 : vector<2x1x256xf32>
    %c0_8 = arith.constant 0 : index
    %c2 = arith.constant 2 : index
    %c0_9 = arith.constant 0 : index
    %9 = vector.load %arg4[%c0_8, %c2, %c0_9] : memref<2x4x256xf32, #tpu.memory_space<vmem>>, vector<2x1x256xf32>
    %c0_10 = arith.constant 0 : index
    %c2_11 = arith.constant 2 : index
    %10 = memref.load %arg2[%c0_10, %c2_11] : memref<3x4xf32, #tpu.memory_space<smem>>
    %11 = vector.broadcast %10 : f32 to vector<2x1x256xf32>
    %12 = arith.mulf %9, %11 : vector<2x1x256xf32>
    %13 = arith.addf %8, %12 : vector<2x1x256xf32>
    %c0_12 = arith.constant 0 : index
    %c3 = arith.constant 3 : index
    %c0_13 = arith.constant 0 : index
    %14 = vector.load %arg4[%c0_12, %c3, %c0_13] : memref<2x4x256xf32, #tpu.memory_space<vmem>>, vector<2x1x256xf32>
    %c0_14 = arith.constant 0 : index
    %c3_15 = arith.constant 3 : index
    %15 = memref.load %arg2[%c0_14, %c3_15] : memref<3x4xf32, #tpu.memory_space<smem>>
    %16 = vector.broadcast %15 : f32 to vector<2x1x256xf32>
    %17 = arith.mulf %14, %16 : vector<2x1x256xf32>
    %18 = arith.addf %13, %17 : vector<2x1x256xf32>
    %c0_16 = arith.constant 0 : index
    %19 = memref.load %arg3[%c0_16] : memref<3xf32, #tpu.memory_space<smem>>
    %20 = vector.broadcast %19 : f32 to vector<2x1x256xf32>
    %21 = arith.addf %18, %20 : vector<2x1x256xf32>
    %c0_17 = arith.constant 0 : index
    %c0_18 = arith.constant 0 : index
    %c0_19 = arith.constant 0 : index
    %22 = vector.load %arg5[%c0_17, %c0_18, %c0_19] : memref<2x3x256xf32, #tpu.memory_space<vmem>>, vector<2x1x256xf32>
    tpu.vector_store %arg5[%c0_17, %c0_18, %c0_19], %21 {strides = array<i32>} : memref<2x3x256xf32, #tpu.memory_space<vmem>>, vector<2x1x256xf32>,
    %c0_20 = arith.constant 0 : index
    %c0_21 = arith.constant 0 : index
    %c0_22 = arith.constant 0 : index
    %23 = vector.load %arg4[%c0_20, %c0_21, %c0_22] : memref<2x4x256xf32, #tpu.memory_space<vmem>>, vector<2x1x256xf32>
    %c1_23 = arith.constant 1 : index
    %c0_24 = arith.constant 0 : index
    %24 = memref.load %arg2[%c1_23, %c0_24] : memref<3x4xf32, #tpu.memory_space<smem>>
    %25 = vector.broadcast %24 : f32 to vector<2x1x256xf32>
    %26 = arith.mulf %23, %25 : vector<2x1x256xf32>
    %c0_25 = arith.constant 0 : index
    %c1_26 = arith.constant 1 : index
    %c0_27 = arith.constant 0 : index
    %27 = vector.load %arg4[%c0_25, %c1_26, %c0_27] : memref<2x4x256xf32, #tpu.memory_space<vmem>>, vector<2x1x256xf32>
    %c1_28 = arith.constant 1 : index
    %c1_29 = arith.constant 1 : index
    %28 = memref.load %arg2[%c1_28, %c1_29] : memref<3x4xf32, #tpu.memory_space<smem>>
    %29 = vector.broadcast %28 : f32 to vector<2x1x256xf32>
    %30 = arith.mulf %27, %29 : vector<2x1x256xf32>
    %31 = arith.addf %26, %30 : vector<2x1x256xf32>
    %c0_30 = arith.constant 0 : index
    %c2_31 = arith.constant 2 : index
    %c0_32 = arith.constant 0 : index
    %32 = vector.load %arg4[%c0_30, %c2_31, %c0_32] : memref<2x4x256xf32, #tpu.memory_space<vmem>>, vector<2x1x256xf32>
    %c1_33 = arith.constant 1 : index
    %c2_34 = arith.constant 2 : index
    %33 = memref.load %arg2[%c1_33, %c2_34] : memref<3x4xf32, #tpu.memory_space<smem>>
    %34 = vector.broadcast %33 : f32 to vector<2x1x256xf32>
    %35 = arith.mulf %32, %34 : vector<2x1x256xf32>
    %36 = arith.addf %31, %35 : vector<2x1x256xf32>
    %c0_35 = arith.constant 0 : index
    %c3_36 = arith.constant 3 : index
    %c0_37 = arith.constant 0 : index
    %37 = vector.load %arg4[%c0_35, %c3_36, %c0_37] : memref<2x4x256xf32, #tpu.memory_space<vmem>>, vector<2x1x256xf32>
    %c1_38 = arith.constant 1 : index
    %c3_39 = arith.constant 3 : index
    %38 = memref.load %arg2[%c1_38, %c3_39] : memref<3x4xf32, #tpu.memory_space<smem>>
    %39 = vector.broadcast %38 : f32 to vector<2x1x256xf32>
    %40 = arith.mulf %37, %39 : vector<2x1x256xf32>
    %41 = arith.addf %36, %40 : vector<2x1x256xf32>
    %c1_40 = arith.constant 1 : index
    %42 = memref.load %arg3[%c1_40] : memref<3xf32, #tpu.memory_space<smem>>
    %43 = vector.broadcast %42 : f32 to vector<2x1x256xf32>
    %44 = arith.addf %41, %43 : vector<2x1x256xf32>
    %c0_41 = arith.constant 0 : index
    %c1_42 = arith.constant 1 : index
    %c0_43 = arith.constant 0 : index
    %45 = vector.load %arg5[%c0_41, %c1_42, %c0_43] : memref<2x3x256xf32, #tpu.memory_space<vmem>>, vector<2x1x256xf32>
    tpu.vector_store %arg5[%c0_41, %c1_42, %c0_43], %44 {strides = array<i32>} : memref<2x3x256xf32, #tpu.memory_space<vmem>>, vector<2x1x256xf32>,
    %c0_44 = arith.constant 0 : index
    %c0_45 = arith.constant 0 : index
    %c0_46 = arith.constant 0 : index
    %46 = vector.load %arg4[%c0_44, %c0_45, %c0_46] : memref<2x4x256xf32, #tpu.memory_space<vmem>>, vector<2x1x256xf32>
    %c2_47 = arith.constant 2 : index
    %c0_48 = arith.constant 0 : index
    %47 = memref.load %arg2[%c2_47, %c0_48] : memref<3x4xf32, #tpu.memory_space<smem>>
    %48 = vector.broadcast %47 : f32 to vector<2x1x256xf32>
    %49 = arith.mulf %46, %48 : vector<2x1x256xf32>
    %c0_49 = arith.constant 0 : index
    %c1_50 = arith.constant 1 : index
    %c0_51 = arith.constant 0 : index
    %50 = vector.load %arg4[%c0_49, %c1_50, %c0_51] : memref<2x4x256xf32, #tpu.memory_space<vmem>>, vector<2x1x256xf32>
    %c2_52 = arith.constant 2 : index
    %c1_53 = arith.constant 1 : index
    %51 = memref.load %arg2[%c2_52, %c1_53] : memref<3x4xf32, #tpu.memory_space<smem>>
    %52 = vector.broadcast %51 : f32 to vector<2x1x256xf32>
    %53 = arith.mulf %50, %52 : vector<2x1x256xf32>
    %54 = arith.addf %49, %53 : vector<2x1x256xf32>
    %c0_54 = arith.constant 0 : index
    %c2_55 = arith.constant 2 : index
    %c0_56 = arith.constant 0 : index
    %55 = vector.load %arg4[%c0_54, %c2_55, %c0_56] : memref<2x4x256xf32, #tpu.memory_space<vmem>>, vector<2x1x256xf32>
    %c2_57 = arith.constant 2 : index
    %c2_58 = arith.constant 2 : index
    %56 = memref.load %arg2[%c2_57, %c2_58] : memref<3x4xf32, #tpu.memory_space<smem>>
    %57 = vector.broadcast %56 : f32 to vector<2x1x256xf32>
    %58 = arith.mulf %55, %57 : vector<2x1x256xf32>
    %59 = arith.addf %54, %58 : vector<2x1x256xf32>
    %c0_59 = arith.constant 0 : index
    %c3_60 = arith.constant 3 : index
    %c0_61 = arith.constant 0 : index
    %60 = vector.load %arg4[%c0_59, %c3_60, %c0_61] : memref<2x4x256xf32, #tpu.memory_space<vmem>>, vector<2x1x256xf32>
    %c2_62 = arith.constant 2 : index
    %c3_63 = arith.constant 3 : index
    %61 = memref.load %arg2[%c2_62, %c3_63] : memref<3x4xf32, #tpu.memory_space<smem>>
    %62 = vector.broadcast %61 : f32 to vector<2x1x256xf32>
    %63 = arith.mulf %60, %62 : vector<2x1x256xf32>
    %64 = arith.addf %59, %63 : vector<2x1x256xf32>
    %c2_64 = arith.constant 2 : index
    %65 = memref.load %arg3[%c2_64] : memref<3xf32, #tpu.memory_space<smem>>
    %66 = vector.broadcast %65 : f32 to vector<2x1x256xf32>
    %67 = arith.addf %64, %66 : vector<2x1x256xf32>
    %c0_65 = arith.constant 0 : index
    %c2_66 = arith.constant 2 : index
    %c0_67 = arith.constant 0 : index
    %68 = vector.load %arg5[%c0_65, %c2_66, %c0_67] : memref<2x3x256xf32, #tpu.memory_space<vmem>>, vector<2x1x256xf32>
    tpu.vector_store %arg5[%c0_65, %c2_66, %c0_67], %67 {strides = array<i32>} : memref<2x3x256xf32, #tpu.memory_space<vmem>>, vector<2x1x256xf32>,
    return
  }
  func.func @transform_0(%arg0: i32, %arg1: i32) -> (i32, i32) {
    %c0_i32 = arith.constant 0 : i32
    %c0_i32_0 = arith.constant 0 : i32
    %c0_i32_1 = arith.constant 0 : i32
    return %c0_i32, %c0_i32_0 : i32, i32
  }
  func.func @transform_1(%arg0: i32, %arg1: i32) -> i32 {
    %c0_i32 = arith.constant 0 : i32
    %c0_i32_0 = arith.constant 0 : i32
    return %c0_i32 : i32
  }
  func.func @transform_2(%arg0: i32, %arg1: i32) -> (i32, i32, i32) {
    %c0_i32 = arith.constant 0 : i32
    %c0_i32_0 = arith.constant 0 : i32
    return %arg0, %c0_i32, %arg1 : i32, i32, i32
  }
  func.func @transform_3(%arg0: i32, %arg1: i32) -> (i32, i32, i32) {
    %c0_i32 = arith.constant 0 : i32
    %c0_i32_0 = arith.constant 0 : i32
    return %arg0, %c0_i32, %arg1 : i32, i32, i32
  }
}

</mosaic_0001>

<bundles_post_ra>
// kernel: tpu_custom_call.1
= control target key start
LH: loop header
LB: loop body
LE: loop exit
PB: predicated region body
PF: predicated region fallthrough
CT: control target
= control target key end

     0   :  { %8 = vsyncpa [#allocation4], 0  ;;  %s352_s0 = inlined_call_operand.hbm [shape: f32[3,4], index: 0, kind: input, shape index: {}]   ;;  %s353_s1 = inlined_call_operand.vmem [shape: f32[3], index: 1, kind: input, shape index: {}]   ;;  %s354_s2 = inlined_call_operand.hbm [shape: f32[2,4,256], index: 2, kind: input, shape index: {}]   ;;  %s355_s3 = inlined_call_operand.vmem [shape: f32[2,3,256], index: 3, kind: output, shape index: {}]  }
   0x1   :  { %9 = vsyncpa [#allocation5], 0  ;;  %s25_s14 = sshll.u32 %s353_s1, 4  ;;  %s26_s14 = int_to_ptr.vmem [resolvable:$true] %s25_s14 }
   0x2   :  { %10 = vsyncpa [#allocation3], 0  ;;  %s251_s15 = smov [#allocation2]   ;;  %s213_s18 = scalar_lea.vmem %s26_s14, 16 }
   0x3   :  { %18 = dma.hbm_to_smem %s352_s0, 64, %s251_s15, [#allocation4]  }
   0x4   :  { %p214_p0 = scmp.ne.s32.totalorder %s26_s14, %s213_s18  ;;  %p218_p1 = scmp.lt.s32.totalorder %s26_s14, %s26_s14 }
   0x5   :  { %p219_p2 = scmp.lt.s32.totalorder %s213_s18, %s213_s18 }
   0x7   :  { %p220_p3 = por %p219_p2, %p218_p1 }
   0x9   :  { %p221_p4 = pnand %p220_p3, %p214_p0 }
   0xb   :  { %224 = shalt.err (!%p221_p4)
}
   0xc   :  { %s252_s19 = smov [#allocation6]   ;;  %s253_s20 = smov [#allocation7]  }
   0xd   :  { %28 = dma.vmem_to_smem %s26_s14, 16, %s252_s19, [#allocation5]  }
   0xe   :  { %s34_s21 = sshll.u32 %s253_s20, 4  ;;  %s35_s21 = int_to_ptr.vmem [resolvable:$true] %s34_s21 }
   0xf   :  { %s233_s1 = scalar_lea.vmem %s35_s21, 256  ;;  %p238_p6 = scmp.lt.s32.totalorder %s35_s21, %s35_s21 }
  0x10   :  { %p234_p5 = scmp.ne.s32.totalorder %s35_s21, %s233_s1  ;;  %p239_p7 = scmp.lt.s32.totalorder %s233_s1, %s233_s1 }
  0x12   :  { %p240_p8 = por %p239_p7, %p238_p6 }
  0x14   :  { %p241_p9 = pnand %p240_p8, %p234_p5 }
  0x16   :  { %244 = shalt.err (!%p241_p9)
}
  0x17   :  { %s254_s0 = smov 128   ;;  %s255_s22 = smov 8  }
  0x18   :  { %40 = dma.hbm_to_vmem [thread:$0]  %s354_s2, 256, %s35_s21, [#allocation3], %s254_s0, %s254_s0, %s255_s22  }
  0x19   :  { %245 = dma.done.wait [#allocation4], 64  }
  0x1a   :  { %246 = vsyncadd [#allocation4], 4294967232 }
  0x1b   :  { %247 = dma.done.wait [#allocation5], 16  }
  0x1c   :  { %248 = vsyncadd [#allocation5], 4294967280 }
  0x1d   :  { %249 = dma.done.wait [#allocation3], 256  }
  0x1e   :  { %250 = vsyncadd [#allocation3], 4294967040 }
  0x1f   :  { %50 = sfence }
  0x20   :  { %s54_s25 = sld [smem:[#allocation2]]  ;;  %v51_v0 = vld [vmem:[#allocation7] ss:$4 sm:$0x3]  ;;  %v92_v17 = vlaneseq }
  0x21   :  { %s182_s26 = sld [smem:[#allocation2 + $0x1]]  ;;  %v59_v1 = vld [vmem:[#allocation7 + $0x1] ss:$4 sm:$0x3] }
  0x22   :  { %s183_s27 = sld [smem:[#allocation2 + $0x2]]  ;;  %v53_v2 = vld [vmem:[#allocation7 + $0x8] ss:$4 sm:$0x3]  ;;  %vm298_vm0 = vcmp.lt.s32.totalorder %v92_v17, 256 }
  0x23   :  { %s184_s28 = sld [smem:[#allocation2 + $0x3]]  ;;  %v61_v3 = vld [vmem:[#allocation7 + $0x9] ss:$4 sm:$0x3] }
  0x24   :  { %s285_s29 = sld [smem:[#allocation6]]  ;;  %v69_v5 = vld [vmem:[#allocation7 + $0x2] ss:$4 sm:$0x3] }
  0x25   :  { %v71_v6 = vld [vmem:[#allocation7 + $0xa] ss:$4 sm:$0x3]  ;;  %v79_v9 = vld [vmem:[#allocation7 + $0x3] ss:$4 sm:$0x3] }
  0x26   :  { %v55_v4 = vstv %s54_s25  ;;  %s287_s2 = sld [smem:[#allocation2 + $0x80]]  ;;  %v81_v14 = vld [vmem:[#allocation7 + $0xb] ss:$4 sm:$0x3] }
  0x27   :  { %v56_v7 = vmul.f32 %v55_v4, %v51_v0  ;;  %v63_v8 = vstv %s182_s26  ;;  %v57_v10 = vmul.f32 %v55_v4, %v53_v2  ;;  %s289_s30 = sld [smem:[#allocation2 + $0x81]]  ;;  %v99_v19 = vld [vmem:[#allocation7] ss:$4 sm:$0x3] }
  0x28   :  { %v64_v11 = vmul.f32 %v63_v8, %v59_v1  ;;  %v73_v12 = vstv %s183_s27  ;;  %v65_v13 = vmul.f32 %v63_v8, %v61_v3  ;;  %s291_s4 = sld [smem:[#allocation2 + $0x82]]  ;;  %v105_v23 = vld [vmem:[#allocation7 + $0x1] ss:$4 sm:$0x3] }
  0x29   :  { %v74_v15 = vmul.f32 %v73_v12, %v69_v5  ;;  %v83_v16 = vstv %s184_s28  ;;  %v75_v18 = vmul.f32 %v73_v12, %v71_v6  ;;  %s293_s5 = sld [smem:[#allocation2 + $0x83]]  ;;  %v113_v25 = vld [vmem:[#allocation7 + $0x2] ss:$4 sm:$0x3] }
  0x2a   :  { %v66_v20 = vadd.f32 %v64_v11, %v56_v7  ;;  %v84_v21 = vmul.f32 %v83_v16, %v79_v9  ;;  %v67_v22 = vadd.f32 %v65_v13, %v57_v10  ;;  %v85_v24 = vmul.f32 %v83_v16, %v81_v14  ;;  %s295_s6 = sld [smem:[#allocation6 + $0x1]]  ;;  %v100_v28 = vld [vmem:[#allocation7 + $0x8] ss:$4 sm:$0x3] }
  0x2b   :  { %v106_v29 = vld [vmem:[#allocation7 + $0x9] ss:$4 sm:$0x3]  ;;  %v89_v30 = vstv %s285_s29  ;;  %v121_v33 = vld [vmem:[#allocation7 + $0x3] ss:$4 sm:$0x3] }
  0x2c   :  { %v76_v26 = vadd.f32 %v74_v15, %v66_v20  ;;  %v77_v27 = vadd.f32 %v75_v18, %v67_v22  ;;  %v102_v32 = vstv %s287_s2  ;;  %s303_s7 = sld [smem:[#allocation2 + $0x100]]  ;;  %v114_v38 = vld [vmem:[#allocation7 + $0xa] ss:$4 sm:$0x3] }
  0x2d   :  { %v103_v36 = vmul.f32 %v102_v32, %v99_v19  ;;  %v108_v37 = vstv %s289_s30  ;;  %s306_s8 = sld [smem:[#allocation2 + $0x101]]  ;;  %v104_v41 = vmul.f32 %v102_v32, %v100_v28  ;;  %v122_v43 = vld [vmem:[#allocation7 + $0xb] ss:$4 sm:$0x3] }
  0x2e   :  { %v86_v34 = vadd.f32 %v84_v21, %v76_v26  ;;  %v87_v35 = vadd.f32 %v85_v24, %v77_v27  ;;  %v109_v39 = vmul.f32 %v108_v37, %v105_v23  ;;  %v116_v40 = vstv %s291_s4  ;;  %s309_s9 = sld [smem:[#allocation2 + $0x102]]  ;;  %v137_v48 = vld [vmem:[#allocation7] ss:$4 sm:$0x3] }
  0x2f   :  { %v110_v42 = vmul.f32 %v108_v37, %v106_v29  ;;  %v117_v46 = vmul.f32 %v116_v40, %v113_v25  ;;  %v124_v47 = vstv %s293_s5  ;;  %s312_s10 = sld [smem:[#allocation2 + $0x103]]  ;;  %v143_v52 = vld [vmem:[#allocation7 + $0x1] ss:$4 sm:$0x3]  ;;  %v118_v54 = vmul.f32 %v116_v40, %v114_v38 }
  0x30   :  { %v90_v44 = vadd.f32 %v89_v30, %v86_v34  ;;  %v91_v45 = vadd.f32 %v89_v30, %v87_v35  ;;  %v111_v49 = vadd.f32 %v109_v39, %v103_v36  ;;  %v125_v50 = vmul.f32 %v124_v47, %v121_v33  ;;  %v138_v53 = vld [vmem:[#allocation7 + $0x8] ss:$4 sm:$0x3]  ;;  %s324_s15 = sld [smem:[#allocation6 + $0x2]] }
  0x31   :  { %v112_v51 = vadd.f32 %v110_v42, %v104_v41  ;;  %v126_v55 = vmul.f32 %v124_v47, %v122_v43  ;;  %v144_v56 = vld [vmem:[#allocation7 + $0x9] ss:$4 sm:$0x3]  ;;  %v130_v58 = vstv %s295_s6  ;;  %v151_v60 = vld [vmem:[#allocation7 + $0x2] ss:$4 sm:$0x3] }
  0x32   :  { %96 = vst.msk [vmem:[%s355_s3] ss:$4 sm:$0x3] %vm298_vm0, %v90_v44  ;;  %185 = vst.msk [vmem:[%s355_s3 + $0x8] ss:$4 sm:$0x3] %vm298_vm0, %v91_v45  ;;  %v119_v57 = vadd.f32 %v117_v46, %v111_v49  ;;  %v140_v59 = vstv %s303_s7 }
  0x33   :  { %v152_v61 = vld [vmem:[#allocation7 + $0xa] ss:$4 sm:$0x3]  ;;  %v120_v62 = vadd.f32 %v118_v54, %v112_v51  ;;  %v141_v63 = vmul.f32 %v140_v59, %v137_v48  ;;  %v146_v0 = vstv %s306_s8  ;;  %v159_v1 = vld [vmem:[#allocation7 + $0x3] ss:$4 sm:$0x3]  ;;  %v142_v2 = vmul.f32 %v140_v59, %v138_v53 }
  0x34   :  { %v127_v3 = vadd.f32 %v125_v50, %v119_v57  ;;  %v147_v4 = vmul.f32 %v146_v0, %v143_v52  ;;  %v154_v5 = vstv %s309_s9  ;;  %v148_v6 = vmul.f32 %v146_v0, %v144_v56  ;;  %v160_v7 = vld [vmem:[#allocation7 + $0xb] ss:$4 sm:$0x3] }
  0x35   :  { %v128_v8 = vadd.f32 %v126_v55, %v120_v62  ;;  %v155_v9 = vmul.f32 %v154_v5, %v151_v60  ;;  %v162_v10 = vstv %s312_s10  ;;  %v156_v11 = vmul.f32 %v154_v5, %v152_v61 }
  0x36   :  { %v131_v12 = vadd.f32 %v130_v58, %v127_v3  ;;  %v149_v13 = vadd.f32 %v147_v4, %v141_v63  ;;  %v163_v14 = vmul.f32 %v162_v10, %v159_v1  ;;  %v150_v16 = vadd.f32 %v148_v6, %v142_v2 }
  0x37   :  { %v132_v15 = vadd.f32 %v130_v58, %v128_v8  ;;  %v164_v17 = vmul.f32 %v162_v10, %v160_v7  ;;  %v168_v19 = vstv %s324_s15 }
  0x38   :  { %191 = vst.msk [vmem:[%s355_s3 + $0x1] ss:$4 sm:$0x3] %vm298_vm0, %v131_v12  ;;  %v157_v18 = vadd.f32 %v155_v9, %v149_v13  ;;  %v158_v20 = vadd.f32 %v156_v11, %v150_v16 }
  0x39   :  { %192 = vst.msk [vmem:[%s355_s3 + $0x9] ss:$4 sm:$0x3] %vm298_vm0, %v132_v15 }
  0x3a   :  { %v165_v21 = vadd.f32 %v163_v14, %v157_v18  ;;  %v166_v22 = vadd.f32 %v164_v17, %v158_v20 }
  0x3c   :  { %v169_v23 = vadd.f32 %v168_v19, %v165_v21  ;;  %v170_v24 = vadd.f32 %v168_v19, %v166_v22 }
  0x3e   :  { %198 = vst.msk [vmem:[%s355_s3 + $0x2] ss:$4 sm:$0x3] %vm298_vm0, %v169_v23  ;;  %199 = vst.msk [vmem:[%s355_s3 + $0xa] ss:$4 sm:$0x3] %vm298_vm0, %v170_v24 }
  0x3f   :  { %179 = vsyncpa [#allocation3], 1 }
  0x40   :  { %180 = vsyncpa [#allocation4], 1 }
  0x41   :  { %181 = vsyncpa [#allocation5], 1 }

</bundles_post_ra>
